<compile_context>
chip_gen: v5e
topology: v5e:2x2
jax: 0.10.0
libtpu: 0.0.40
codegen_flags: <defaults>
</compile_context>

<pallas_src>
import functools

import jax
import jax.numpy as jnp
from jax import lax
from jax.experimental import pallas as pl
from jax.experimental.pallas import tpu as pltpu

PART_NUM = 7
BN_EPS = 1e-5


# ----------------------------------------------------------------------------
# Fused kernel: SAAA attention pooling + global mean pooling + DualBNNeck (eval)
# ----------------------------------------------------------------------------
def saaa_bnneck_kernel(sub_ref, feat_ref, w_ref, scale_ref, bias_ref, out_ref,
                       *, unroll):
    """sub_ref  : (B_pad,)      int32 in SMEM (scalar prefetch); 1 -> infrared
       feat_ref : (TB, C, S)    backbone features, native (B, C, H*W) view
       w_ref    : (P, C)        1x1-conv weights producing per-part logits
       scale_ref: (2, P+1, C)   folded BN scale  (gamma * rsqrt(var + eps))
       bias_ref : (2, P+1, C)   folded BN bias   (beta - mean * scale)
       out_ref  : (TB, P+1, C)  BN'd [part_0..part_{P-1}, global] features"""
    TB, C, S = feat_ref.shape

    # Hoisted small operands (resident across the per-block sample loop).
    w = w_ref[...]                                   # (P, C) feature dtype
    scale0 = scale_ref[0]                            # visible   (P+1, C) f32
    dscale = scale_ref[1] - scale0                   # infrared - visible
    bias0 = bias_ref[0]
    dbias = bias_ref[1] - bias0

    # Uniform row appended to the attention weights -> spatial mean in the
    # same matmul as the attention pooling.
    mean_row = jnp.full((1, S), 1.0 / S, dtype=jnp.float32)
    one_row = jnp.ones((1, 1), dtype=jnp.float32)

    base = pl.program_id(0) * TB

    def body(i, carry):
        f = feat_ref[i]                              # (C, S), native dtype

        # Part logits (P, S): lane-dense softmax over S (f32 math, small).
        logits = jnp.dot(w, f, preferred_element_type=jnp.float32)   # (P, S)
        m = jnp.max(logits, axis=-1, keepdims=True)
        e = jnp.exp(logits - m)                      # (P, S)
        denom = jnp.sum(e, axis=-1, keepdims=True)   # (P, 1)

        # [attention weights ; uniform row] back in the feature dtype so the
        # MXU runs native bf16 x bf16 passes (f32 accumulate).
        wts = jnp.concatenate([e, mean_row], axis=0).astype(f.dtype)  # (P+1,S)

        # Contract S of BOTH operands: the big (C, S) tile stays untransposed;
        # only the tiny (P+1, S) weights / (C, P+1) result move through XLU.
        pooled_t = lax.dot_general(
            f, wts, (((1,), (1,)), ((), ())),
            preferred_element_type=jnp.float32)                       # (C, P+1)
        pooled = pooled_t.T                                           # (P+1, C)

        # Normalize after the matmul (softmax denominator via EUP reciprocal;
        # the mean row is already normalized -> multiply by 1).
        norm = jnp.concatenate(
            [pl.reciprocal(denom, approx=True), one_row], axis=0)     # (P+1, 1)
        pooled = pooled * norm

        # DualBNNeck (eval) with per-sample modality select from SMEM.
        s_i = (sub_ref[base + i] == 1).astype(jnp.float32)            # scalar
        sc = scale0 + s_i * dscale
        bi = bias0 + s_i * dbias
        out_ref[i] = (pooled * sc + bi).astype(out_ref.dtype)
        return carry

    lax.fori_loop(0, TB, body, 0, unroll=unroll)


# ----------------------------------------------------------------------------
# Wrapper
# ----------------------------------------------------------------------------
def _choose_block_batch(B, per_sample_bytes, max_block_bytes):
    """Per-step batch TB from the double-buffered-input VMEM budget.

    Prefers a divisor of B (no padding); otherwise pads B to a multiple of the
    VMEM-optimal TB. Keeps >=2 grid steps so v7x's two TensorCores both work.
    Returns (TB, B_padded)."""
    tb = max(1, int(max_block_bytes) // (2 * per_sample_bytes))
    tb = min(tb, B)
    if B >= 2:
        tb = min(tb, pl.cdiv(B, 2))
    best_div = max(d for d in range(1, tb + 1) if B % d == 0)
    if 2 * best_div >= tb:          # close enough to optimal -> avoid padding
        return best_div, B
    b_pad = pl.cdiv(B, tb) * tb
    return tb, b_pad


def baseline_eval_forward(global_feat_nchw, cam_ids, params, *,
                          compute_dtype=jnp.bfloat16,
                          max_block_bytes=30 << 20,
                          vmem_limit_bytes=48 << 20):
    """Eval forward of Baseline after the backbone.

    global_feat_nchw: (B, C, H, W) backbone feature map (any float dtype).
    cam_ids         : (B,) int camera ids; cam 3/6 -> infrared.
    Returns feats   : (B, (P+1)*C) == bn_neck(cat([part_feat, global_feat], 1), sub)
    """
    B, C, H, W = global_feat_nchw.shape
    S = H * W
    P = params["w_attn"].shape[0]
    F = (P + 1) * C

    # NCHW -> (B, C, S) free view; feature path in bf16 (halves DMA bytes).
    # TODO(synk): ideally the backbone already emits bf16 so this cast is free.
    feat = global_feat_nchw.reshape(B, C, S).astype(compute_dtype)
    w_attn = params["w_attn"].astype(compute_dtype)

    # Fold BN running stats into a single scale/bias (tiny, done once, f32).
    inv = lax.rsqrt(params["bn_var"].astype(jnp.float32) + BN_EPS)       # (2, F)
    gamma = params["bn_gamma"].astype(jnp.float32)
    scale = (gamma * inv).reshape(2, P + 1, C)
    bias = (params["bn_beta"].astype(jnp.float32)
            - params["bn_mean"].astype(jnp.float32) * gamma * inv
            ).reshape(2, P + 1, C)

    # sub = (cam == 3) + (cam == 6); kept on the scalar path (SMEM prefetch).
    sub = jnp.logical_or(cam_ids == 3, cam_ids == 6).astype(jnp.int32)  # (B,)

    TB, B_pad = _choose_block_batch(B, C * S * feat.dtype.itemsize,
                                    max_block_bytes)
    if B_pad > B:
        feat = jnp.pad(feat, ((0, B_pad - B), (0, 0), (0, 0)))
        sub = jnp.pad(sub, (0, B_pad - B))

    grid_spec = pltpu.PrefetchScalarGridSpec(
        num_scalar_prefetch=1,
        grid=(B_pad // TB,),
        in_specs=[
            pl.BlockSpec((TB, C, S), lambda g, sub_r: (g, 0, 0)),
            pl.BlockSpec((P, C), lambda g, sub_r: (0, 0)),
            pl.BlockSpec((2, P + 1, C), lambda g, sub_r: (0, 0, 0)),
            pl.BlockSpec((2, P + 1, C), lambda g, sub_r: (0, 0, 0)),
        ],
        out_specs=pl.BlockSpec((TB, P + 1, C), lambda g, sub_r: (g, 0, 0)),
    )

    cost = pl.CostEstimate(
        flops=2 * (2 * P + 1) * B_pad * C * S,
        transcendentals=B_pad * P * S,
        bytes_accessed=(B_pad * C * S * feat.dtype.itemsize
                        + B_pad * (P + 1) * C * 4
                        + w_attn.size * w_attn.dtype.itemsize
                        + 2 * scale.size * 4
                        + B_pad * 4),
    )

    out = pl.pallas_call(
        functools.partial(saaa_bnneck_kernel, unroll=bool(TB <= 8)),
        out_shape=jax.ShapeDtypeStruct((B_pad, P + 1, C), jnp.float32),
        grid_spec=grid_spec,
        compiler_params=pltpu.CompilerParams(
            dimension_semantics=("parallel",),
            vmem_limit_bytes=vmem_limit_bytes),
        cost_estimate=cost,
    )(sub, feat, w_attn, scale, bias)

    # (B, P+1, C) -> (B, (P+1)*C): free view; matches torch.cat([part, global], 1).
    return out[:B].reshape(B, F)


# ----------------------------------------------------------------------------
# Pure-JAX reference (for correctness check only)
# ----------------------------------------------------------------------------
def baseline_eval_reference(global_feat_nchw, cam_ids, params):
    B, C, H, W = global_feat_nchw.shape
    S = H * W
    P = params["w_attn"].shape[0]
    f = global_feat_nchw.reshape(B, C, S).astype(jnp.float32)            # (B, C, S)
    logits = jnp.einsum("pc,bcs->bps",
                        params["w_attn"].astype(jnp.float32), f)         # (B, P, S)
    attn = jax.nn.softmax(logits, axis=-1)
    part = jnp.einsum("bps,bcs->bpc", attn, f)                           # (B, P, C)
    gmean = f.mean(axis=-1)                                              # (B, C)
    feats = jnp.concatenate([part.reshape(B, P * C), gmean], axis=1)     # (B, F)
    sub = jnp.logical_or(cam_ids == 3, cam_ids == 6)
    inv = lax.rsqrt(params["bn_var"] + BN_EPS)
    y = ((feats[:, None, :] - params["bn_mean"]) * inv
         * params["bn_gamma"] + params["bn_beta"])                       # (B, 2, F)
    return jnp.where(sub[:, None], y[:, 1], y[:, 0])


def init_params(key, C, P):
    """Deterministic synthetic parameters (shapes follow Baseline.__init__)."""
    F = C * (P + 1)  # base_dim + dim * part_num
    k1, k2, k3 = jax.random.split(key, 3)
    idx = jnp.arange(F, dtype=jnp.float32)
    return dict(
        w_attn=0.02 * jax.random.normal(k1, (P, C), jnp.float32),
        bn_gamma=jnp.stack([jnp.ones((F,), jnp.float32),
                            1.0 + 0.05 * jnp.sin(idx / 7.0)]).astype(jnp.float32),
        bn_beta=jnp.stack([jnp.zeros((F,), jnp.float32),
                           0.02 * jnp.cos(idx / 5.0)]).astype(jnp.float32),
        bn_mean=0.1 * jax.random.normal(k2, (2, F), jnp.float32),
        bn_var=1.0 + 0.1 * jax.random.uniform(k3, (2, F), jnp.float32),
    )


if __name__ == "__main__":
    key = jax.random.PRNGKey(0)
    k_in, k_par = jax.random.split(key)

    # Small shapes: C=64 is a scaled-down stand-in for the 2048-d resnet50 map.
    B, C, H, W = 2, 64, 8, 8
    global_feat = jax.random.normal(k_in, (B, C, H, W), jnp.float32)
    # bf16 feature path (halves HBM traffic); reference consumes the same bf16
    # tensor so the check isolates the kernel math from the dtype decision.
    global_feat_bf16 = global_feat.astype(jnp.bfloat16)
    cam_ids = jnp.array([3, 1], dtype=jnp.int32)   # sample 0 infrared, 1 visible

    params = init_params(k_par, C, PART_NUM)

    out = baseline_eval_forward(global_feat_bf16, cam_ids, params)
    out = jax.block_until_ready(out)

    assert out.shape == (B, C * (PART_NUM + 1))
    assert bool(jnp.all(jnp.isfinite(out)))

    ref = baseline_eval_reference(global_feat_bf16, cam_ids, params)
    max_err = float(jnp.max(jnp.abs(out - ref)))
    assert max_err < 2e-2, f"mismatch vs reference: max abs err {max_err}"

    print("KERNEL_OK")
</pallas_src>

<mosaic_0001>
module attributes {stable_mosaic.version = 11 : i64} {
  func.func @saaa_bnneck_kernel(%arg0: i32, %arg1: memref<2xi32, #tpu.memory_space<smem>>, %arg2: memref<1x64x64xbf16, #tpu.memory_space<vmem>>, %arg3: memref<7x64xbf16, #tpu.memory_space<vmem>>, %arg4: memref<2x8x64xf32, #tpu.memory_space<vmem>>, %arg5: memref<2x8x64xf32, #tpu.memory_space<vmem>>, %arg6: memref<1x8x64xf32, #tpu.memory_space<vmem>>) attributes {dimension_semantics = [#tpu.dimension_semantics<parallel>], iteration_bounds = array<i64: 2>, scalar_prefetch = 1 : i64, scratch_operands = 0 : i64, tpu.core_type = #tpu.core_type<tc>, window_params = [{transform_indices = @transform_0, window_bounds = array<i64: 1, 64, 64>}, {pipeline_mode = #tpu.pipeline_mode<synchronous>, transform_indices = @transform_1, window_bounds = array<i64: 7, 64>}, {pipeline_mode = #tpu.pipeline_mode<synchronous>, transform_indices = @transform_2, window_bounds = array<i64: 2, 8, 64>}, {pipeline_mode = #tpu.pipeline_mode<synchronous>, transform_indices = @transform_3, window_bounds = array<i64: 2, 8, 64>}, {transform_indices = @transform_4, window_bounds = array<i64: 1, 8, 64>}]} {
    %c0 = arith.constant 0 : index
    %c0_0 = arith.constant 0 : index
    %0 = vector.load %arg3[%c0, %c0_0] : memref<7x64xbf16, #tpu.memory_space<vmem>>, vector<7x64xbf16>
    %c0_1 = arith.constant 0 : index
    %c0_2 = arith.constant 0 : index
    %c0_3 = arith.constant 0 : index
    %1 = vector.load %arg4[%c0_1, %c0_2, %c0_3] : memref<2x8x64xf32, #tpu.memory_space<vmem>>, vector<1x8x64xf32>
    %2 = vector.shape_cast %1 : vector<1x8x64xf32> to vector<8x64xf32>
    %c1 = arith.constant 1 : index
    %c0_4 = arith.constant 0 : index
    %c0_5 = arith.constant 0 : index
    %3 = vector.load %arg4[%c1, %c0_4, %c0_5] : memref<2x8x64xf32, #tpu.memory_space<vmem>>, vector<1x8x64xf32>
    %4 = vector.shape_cast %3 : vector<1x8x64xf32> to vector<8x64xf32>
    %5 = arith.subf %4, %2 : vector<8x64xf32>
    %c0_6 = arith.constant 0 : index
    %c0_7 = arith.constant 0 : index
    %c0_8 = arith.constant 0 : index
    %6 = vector.load %arg5[%c0_6, %c0_7, %c0_8] : memref<2x8x64xf32, #tpu.memory_space<vmem>>, vector<1x8x64xf32>
    %7 = vector.shape_cast %6 : vector<1x8x64xf32> to vector<8x64xf32>
    %c1_9 = arith.constant 1 : index
    %c0_10 = arith.constant 0 : index
    %c0_11 = arith.constant 0 : index
    %8 = vector.load %arg5[%c1_9, %c0_10, %c0_11] : memref<2x8x64xf32, #tpu.memory_space<vmem>>, vector<1x8x64xf32>
    %9 = vector.shape_cast %8 : vector<1x8x64xf32> to vector<8x64xf32>
    %10 = arith.subf %9, %7 : vector<8x64xf32>
    %cst = arith.constant 1.562500e-02 : f32
    %11 = vector.broadcast %cst : f32 to vector<1x64xf32>
    %cst_12 = arith.constant 1.000000e+00 : f32
    %12 = vector.broadcast %cst_12 : f32 to vector<1x1xf32>
    %c1_i32 = arith.constant 1 : i32
    %13 = arith.muli %arg0, %c1_i32 : i32
    %c0_i32 = arith.constant 0 : i32
    %14 = arith.index_cast %c0_i32 : i32 to index
    %c0_13 = arith.constant 0 : index
    %c0_14 = arith.constant 0 : index
    %15 = vector.load %arg2[%14, %c0_13, %c0_14] : memref<1x64x64xbf16, #tpu.memory_space<vmem>>, vector<1x64x64xbf16>
    %16 = vector.shape_cast %15 : vector<1x64x64xbf16> to vector<64x64xbf16>
    %cst_15 = arith.constant dense<0.000000e+00> : vector<7x64xf32>
    %17 = tpu.matmul %0, %16, %cst_15 {dimension_numbers = #tpu.dot_dimension_numbers<[1], [0], [0], [1], [0, 0, 1, 1], [], []>} : vector<7x64xbf16>, vector<64x64xbf16>, vector<7x64xf32> -> vector<7x64xf32>
    %cst_16 = arith.constant dense<0xFF800000> : vector<7xf32>
    %18 = vector.multi_reduction <maximumf>, %17, %cst_16 [1] : vector<7x64xf32> to vector<7xf32>
    %19 = vector.shape_cast %18 : vector<7xf32> to vector<7x1xf32>
    %20 = vector.broadcast %19 : vector<7x1xf32> to vector<7x64xf32>
    %21 = arith.subf %17, %20 : vector<7x64xf32>
    %22 = math.exp %21 : vector<7x64xf32>
    %cst_17 = arith.constant dense<0.000000e+00> : vector<7xf32>
    %23 = vector.multi_reduction <add>, %22, %cst_17 [1] : vector<7x64xf32> to vector<7xf32>
    %24 = vector.shape_cast %23 : vector<7xf32> to vector<7x1xf32>
    %25 = tpu.concatenate %22, %11 in 0 : vector<7x64xf32>, vector<1x64xf32> -> vector<8x64xf32>
    %26 = arith.truncf %25 : vector<8x64xf32> to vector<8x64xbf16>
    %cst_18 = arith.constant dense<0.000000e+00> : vector<64x8xf32>
    %27 = tpu.matmul %16, %26, %cst_18 {dimension_numbers = #tpu.dot_dimension_numbers<[1], [1], [0], [0], [0, 0, 1, 0], [], []>} : vector<64x64xbf16>, vector<8x64xbf16>, vector<64x8xf32> -> vector<64x8xf32>
    %28 = tpu.transpose %27, [1, 0] : vector<64x8xf32> -> vector<8x64xf32>
    %29 = tpu.reciprocal %24 {approx = true} : vector<7x1xf32> -> vector<7x1xf32>
    %30 = tpu.concatenate %29, %12 in 0 : vector<7x1xf32>, vector<1x1xf32> -> vector<8x1xf32>
    %31 = vector.broadcast %30 : vector<8x1xf32> to vector<8x64xf32>
    %32 = arith.mulf %28, %31 : vector<8x64xf32>
    %33 = arith.addi %13, %c0_i32 : i32
    %34 = arith.index_cast %33 : i32 to index
    %35 = memref.load %arg1[%34] : memref<2xi32, #tpu.memory_space<smem>>
    %c1_i32_19 = arith.constant 1 : i32
    %36 = arith.cmpi eq, %35, %c1_i32_19 : i32
    %37 = arith.extui %36 : i1 to i32
    %38 = arith.sitofp %37 : i32 to f32
    %39 = vector.broadcast %38 : f32 to vector<8x64xf32>
    %40 = arith.mulf %39, %5 : vector<8x64xf32>
    %41 = arith.addf %2, %40 : vector<8x64xf32>
    %42 = vector.broadcast %38 : f32 to vector<8x64xf32>
    %43 = arith.mulf %42, %10 : vector<8x64xf32>
    %44 = arith.addf %7, %43 : vector<8x64xf32>
    %45 = arith.mulf %32, %41 : vector<8x64xf32>
    %46 = arith.addf %45, %44 : vector<8x64xf32>
    %47 = arith.index_cast %c0_i32 : i32 to index
    %c0_20 = arith.constant 0 : index
    %c0_21 = arith.constant 0 : index
    %48 = vector.load %arg6[%47, %c0_20, %c0_21] : memref<1x8x64xf32, #tpu.memory_space<vmem>>, vector<1x8x64xf32>
    %49 = vector.shape_cast %48 : vector<1x8x64xf32> to vector<8x64xf32>
    %50 = vector.shape_cast %46 : vector<8x64xf32> to vector<1x8x64xf32>
    tpu.vector_store %arg6[%47, %c0_20, %c0_21], %50 {strides = array<i32>} : memref<1x8x64xf32, #tpu.memory_space<vmem>>, vector<1x8x64xf32>,
    %c1_i32_22 = arith.constant 1 : i32
    return
  }
  func.func @transform_0(%arg0: i32, %arg1: memref<2xi32, #tpu.memory_space<smem>>) -> (i32, i32, i32) {
    %c0_i32 = arith.constant 0 : i32
    %c0_i32_0 = arith.constant 0 : i32
    %c0_i32_1 = arith.constant 0 : i32
    return %arg0, %c0_i32, %c0_i32_0 : i32, i32, i32
  }
  func.func @transform_1(%arg0: i32, %arg1: memref<2xi32, #tpu.memory_space<smem>>) -> (i32, i32) {
    %c0_i32 = arith.constant 0 : i32
    %c0_i32_0 = arith.constant 0 : i32
    %c0_i32_1 = arith.constant 0 : i32
    return %c0_i32, %c0_i32_0 : i32, i32
  }
  func.func @transform_2(%arg0: i32, %arg1: memref<2xi32, #tpu.memory_space<smem>>) -> (i32, i32, i32) {
    %c0_i32 = arith.constant 0 : i32
    %c0_i32_0 = arith.constant 0 : i32
    %c0_i32_1 = arith.constant 0 : i32
    %c0_i32_2 = arith.constant 0 : i32
    return %c0_i32, %c0_i32_0, %c0_i32_1 : i32, i32, i32
  }
  func.func @transform_3(%arg0: i32, %arg1: memref<2xi32, #tpu.memory_space<smem>>) -> (i32, i32, i32) {
    %c0_i32 = arith.constant 0 : i32
    %c0_i32_0 = arith.constant 0 : i32
    %c0_i32_1 = arith.constant 0 : i32
    %c0_i32_2 = arith.constant 0 : i32
    return %c0_i32, %c0_i32_0, %c0_i32_1 : i32, i32, i32
  }
  func.func @transform_4(%arg0: i32, %arg1: memref<2xi32, #tpu.memory_space<smem>>) -> (i32, i32, i32) {
    %c0_i32 = arith.constant 0 : i32
    %c0_i32_0 = arith.constant 0 : i32
    %c0_i32_1 = arith.constant 0 : i32
    return %arg0, %c0_i32, %c0_i32_0 : i32, i32, i32
  }
}

</mosaic_0001>

<bundles_post_ra>
// kernel: tpu_custom_call.1
= control target key start
LH: loop header
LB: loop body
LE: loop exit
PB: predicated region body
PF: predicated region fallthrough
CT: control target
= control target key end

     0   :  { %s905_s21 = smov [#allocation3]   ;;  %s1118_s0 = inlined_call_operand.hbm [shape: s32[2], index: 0, kind: input, shape index: {}]   ;;  %s1119_s1 = inlined_call_operand.hbm [shape: bf16[2,64,64], index: 1, kind: input, shape index: {}]   ;;  %s1120_s2 = inlined_call_operand.hbm [shape: bf16[7,64], index: 2, kind: input, shape index: {}]   ;;  %s1121_s3 = inlined_call_operand.hbm [shape: f32[2,8,64], index: 3, kind: input, shape index: {}]   ;;  %s1122_s4 = inlined_call_operand.hbm [shape: f32[2,8,64], index: 4, kind: input, shape index: {}]   ;;  %s1123_s5 = inlined_call_operand.hbm [shape: f32[2,8,64], index: 5, kind: output, shape index: {}]  }
   0x1   :  { %s11_s20 = sshll.u32 %s1118_s0, 4  ;;  %s12_s20 = int_to_ptr.hbm [resolvable:$true] %s11_s20 }
   0x2   :  { %14 = dma.hbm_to_smem %s12_s20, 16, %s905_s21, [#allocation2] }
   0x3   :  { %871 = dma.done.wait [#allocation2], 16 }
   0x4   :  { %872 = vsyncadd [#allocation2], 4294967280 }
   0x5   :  { %17 = sfence }
   0x6   :  { %18 = vsyncpa [#allocation5], 0 }
   0x7   :  { %20 = vsyncpa [#allocation5 + $0x1], 0 }
   0x8   :  { %21 = vsyncpa [#allocation8], 0 }
   0x9   :  { %22 = vsyncpa [#allocation11], 0 }
   0xa   :  { %23 = vsyncpa [#allocation6], 0 }
   0xb   :  { %25 = vsyncpa [#allocation6 + $0x1], 0  ;;  %s947_s22 = smov 0   ;;  %s949_s23 = smov 0  }
   0xc   :  { %s951_s24 = smov 0   ;;  %s953_s25 = smov 0  }
   0xd LB: > { %s968_s0 = sadd.s32 4294967295, %s903_s25   ;;  %s558_s26 = sadd.s32 4294967294, %s903_s25   ;;  %s903_s25 = sphi %s953_s25, %s1134_s25   ;;  %s899_s24 = sphi %s951_s24, %s1133_s24   ;;  %s895_s23 = sphi %s949_s23, %s1132_s23   ;;  %s891_s22 = sphi %s947_s22, %s1131_s22  }
   0xe   : > { %p51_p0 = scmp.ne.s32.totalorder %s895_s23, %s891_s22  ;;  %p52_p1 = scmp.eq.s32.totalorder %s968_s0, 0 }
   0xf   : > { %p138_p2 = scmp.eq.s32.totalorder %s968_s0, 1  ;;  %p144_p3 = scmp.eq.s32.totalorder %s558_s26, 1 }
  0x10   : > { %p977_p4 = por %p52_p1, %p51_p0  ;;  %p559_p5 = scmp.ge.s32.totalorder %s903_s25, 1 }
  0x11   : > { %p982_p6 = por %p144_p3, %p51_p0  ;;  %p151_p7 = scmp.lt.s32.totalorder %s903_s25, 3 }
  0x12   : > { %s163_s6 = sshll.u32 %s1120_s2, 4  ;;  %s906_s8 = smov [#allocation7]   ;;  %s164_s6 = int_to_ptr.hbm [resolvable:$true] %s163_s6 }
  0x13   : > { %p990_p8 = pnand %p559_p5, %p151_p7  ;;  %s165_s9 = sshll.u32 %s906_s8, 4  ;;  %s166_s9 = int_to_ptr.vmem [resolvable:$true] %s165_s9 }
  0x14   : > { %s174_s12 = sshll.u32 %s1121_s3, 4  ;;  %s907_s14 = smov [#allocation9]   ;;  %s175_s12 = int_to_ptr.hbm [resolvable:$true] %s174_s12 }
  0x15   : > { %p621_p10 = pneg %p990_p8  ;;  %s176_s15 = sshll.u32 %s907_s14, 4  ;;  %s177_s15 = int_to_ptr.vmem [resolvable:$true] %s176_s15 }
  0x16   : > { %s908_s16 = smov 128   ;;  %s909_s17 = smov 8  }
  0x17   : > { %p1002_p11 = pnand %p621_p10, %p52_p1  ;;  %s188_s20 = sshll.u32 %s1122_s4, 4  ;;  %s189_s20 = int_to_ptr.hbm [resolvable:$true] %s188_s20 }
  0x18   : > { %s910_s21 = smov [#allocation10]   ;;  %s1016_s29 = sadd.s32 1, %s903_s25  }
  0x19   : > { %624 = dma.hbm_to_vmem [thread:$0]  (!%p1002_p11), %s164_s6, 64, %s166_s9, [#allocation8]  }
  0x1a   : > { %627 = dma.hbm_to_vmem [thread:$0]  (!%p1002_p11), %s175_s12, 256, %s177_s15, [#allocation8], %s908_s16, %s908_s16, %s909_s17  }
  0x1b   : > { %s190_s26 = sshll.u32 %s910_s21, 4  ;;  %s35_s30 = ssub.s32 %s903_s25, %s1016_s29  ;;  %s191_s26 = int_to_ptr.vmem [resolvable:$true] %s190_s26 }
  0x1c   : > { %630 = dma.hbm_to_vmem [thread:$0]  (!%p1002_p11), %s189_s20, 256, %s191_s26, [#allocation11], %s908_s16, %s908_s16, %s909_s17  }
  0x1d   : > { %s38_s6 = sadd.s32 1, %s899_s24  ;;  %p36_p12 = scmp.eq.s32.totalorder %s35_s30, 0 }
  0x1e   : > { %p45_p13 = scmp.ne.s32.totalorder %s899_s24, %s895_s23  ;;  %p46_p0 = scmp.eq.s32.totalorder %s903_s25, 0 }
  0x1f   : > { %p642_p3 = scmp.lt.s32.totalorder %s903_s25, 2  ;;  %s204_s10 = sand.u32 1, %s899_s24  }
  0x20   : > { %s1026_s8 = scalar_select %p36_p12, %s899_s24, %s38_s6  }
  0x21   : > { %p47_p5 = por %p46_p0, %p45_p13  ;;  %p1030_p7 = por %p138_p2, %p45_p13 }
  0x22   : > { %s598_s11 = sshll.u32 %s903_s25, 5  ;;  %s564_s12 = sshll.u32 %s204_s10, 5 }
  0x23   : > { %s213_s15 = scalar_lea.hbm %s1119_s1, %s598_s11  ;;  %s208_s17 = scalar_lea.vmem [#allocation4], %s564_s12 }
  0x24   : > { %s214_s16 = sshll.u32 %s213_s15, 4  ;;  %s216_s18 = sshll.u32 %s208_s17, 4  ;;  %s215_s16 = int_to_ptr.hbm [resolvable:$true] %s214_s16  ;;  %s217_s18 = int_to_ptr.vmem [resolvable:$true] %s216_s18 }
  0x25   : > { %p1041_p10 = pnand %p642_p3, %p47_p5  ;;  %s205_s20 = scalar_lea.sflag [#allocation5], %s204_s10 }
  0x26   : > { %s797_s21 = sshra.s32 %s215_s16, 4  ;;  %s804_s11 = scalar_lea.hbm %s1119_s1, 64  ;;  %s798_s21 = int_to_ptr.hbm [resolvable:$true] %s797_s21 }
  0x27   : > { %s799_s26 = scalar_lea.hbm %s798_s21, 32  ;;  %p801_p11 = pneg %p1041_p10 }
  0x28   : > { %p800_p2 = scmp.ne.s32.totalorder %s798_s21, %s799_s26  ;;  %p805_p0 = scmp.lt.s32.totalorder %s798_s21, %s1119_s1 }
  0x29   : > { %p806_p3 = scmp.lt.s32.totalorder %s804_s11, %s799_s26 }
  0x2a   : > { %p802_p12 = pnand %p801_p11, %p800_p2 }
  0x2b   : > { %p807_p5 = por %p806_p3, %p805_p0 }
  0x2c   : > { %p803_p13 = pneg %p802_p12 }
  0x2e   : > { %p808_p9 = pnand %p807_p5, %p803_p13 }
  0x30   : > { %811 = shalt.err (!%p808_p9)
}
  0x31   : > { %s911_s10 = smov 64   ;;  %s912_s14 = smov 4  }
  0x32   : > { %634 = dma.hbm_to_vmem [thread:$0]  (!%p1041_p10), %s215_s16, 512, %s217_s18, %s205_s20, %s911_s10, %s911_s10, %s912_s14  }
  0x33   : > { %228 = sbr.rel (%p990_p8) target bundleno = 642 (0x282), region = 36  ;;  %s1058_s15 = sand.u32 (!%p990_p8), 1, %s895_s23  }
  0x34   : > { %s568_s17 = sshll.u32 (!%p990_p8), %s1058_s15, 5  ;;  %s231_s21 = scalar_lea.sflag (!%p990_p8), [#allocation5], %s1058_s15 }
  0x35   : > { %s234_s26 = scalar_lea.vmem (!%p990_p8), [#allocation4], %s568_s17 }
  0x38   : > { %874 = dma.done.wait (%p977_p4), %s231_s21, 512  }
  0x39   : > { %876 = vsyncadd (%p977_p4), %s231_s21, 4294966784 }
  0x3a   : > { %878 = dma.done.wait (%p52_p1), [#allocation8], 320  }
  0x3b   : > { %880 = vsyncadd (%p52_p1), [#allocation8], 4294966976 }
  0x3c   : > { %882 = dma.done.wait (%p52_p1), [#allocation11], 256  }
  0x3d   : > { %884 = vsyncadd (%p52_p1), [#allocation11], 4294967040  ;;  %v602_v0 = vld [vmem:[%s234_s26 + $0x18] sm:$0xff]  ;;  %v601_v1 = vld [vmem:[%s234_s26 + $0x10] sm:$0xff]  ;;  %vm317_vm0 = vcmask 523264   ;;  %vm334_vm1 = vcmask 522240  }
  0x3e   : > { %325 = vmatpush.bf16.msra.mxu0 %v602_v0  ;;  %v600_v2 = vld [vmem:[%s234_s26 + $0x8] sm:$0xff]  ;;  %v599_v3 = vld [vmem:[%s234_s26] sm:$0xff]  ;;  %vm344_vm2 = vcmask 1046528   ;;  %v913_v16 = vmov 0   ;;  %s431_s27 = sld [smem:[#allocation3 + %s968_s0]]  ;;  %v281_v30 = vld [vmem:[#allocation10] sm:$0xff] }
  0x3f   : > { %v276_v4 = vld [vmem:[#allocation7] sm:$0xf]  ;;  %689 = vset.pattern.permute.xlu2 %v913_v16  ;;  %690 = vset.pattern.permute.xlu0 %v913_v16  ;;  %v277_v28 = vld [vmem:[#allocation9] sm:$0xff]  ;;  %v279_v29 = vld [vmem:[#allocation9 + $0x8] sm:$0xff]  ;;  %s572_s18 = sshll.u32 %s1058_s15, 3  ;;  %s595_s19 = sshll.u32 %s968_s0, 3 }
  0x40   : > { %v283_v31 = vld [vmem:[#allocation10 + $0x8] sm:$0xff]  ;;  %v280_v32 = vsub.f32 %v279_v29, %v277_v28  ;;  %s454_s6 = scalar_lea.hbm %s1123_s5, %s595_s19  ;;  %s274_s11 = scalar_lea.vmem [#allocation12], %s572_s18 }
  0x41   : > { %v284_v34 = vsub.f32 %v283_v31, %v281_v30  ;;  %s456_s12 = sshll.u32 %s274_s11, 4  ;;  %s458_s13 = sshll.u32 %s454_s6, 4  ;;  %s457_s12 = int_to_ptr.vmem [resolvable:$true] %s456_s12  ;;  %s459_s13 = int_to_ptr.hbm [resolvable:$true] %s458_s13 }
  0x42   : > { %326 = vmatpush.bf16.msra.mxu0 %v601_v1  ;;  %s444_s0 = scalar_lea.sflag [#allocation6], %s1058_s15  ;;  %s841_s10 = sshra.s32 %s459_s13, 4  ;;  %s842_s10 = int_to_ptr.hbm [resolvable:$true] %s841_s10 }
  0x43   : > { %s843_s14 = scalar_lea.hbm %s842_s10, 8  ;;  %s847_s26 = scalar_lea.hbm %s1123_s5, 16 }
  0x44   : > { %p432_p1 = scmp.eq.s32.totalorder %s431_s27, 1  ;;  %p844_p4 = scmp.ne.s32.totalorder %s842_s10, %s843_s14 }
  0x45   : > { %p848_p10 = scmp.lt.s32.totalorder %s842_s10, %s1123_s5  ;;  %p849_p2 = scmp.lt.s32.totalorder %s847_s26, %s843_s14 }
  0x46   : > { %327 = vmatpush.bf16.msra.mxu0 %v600_v2  ;;  %s433_s7 = scalar_select %p432_p1, 1, 0 }
  0x47   : > { %p845_p8 = pnand %p844_p4, %p1030_p7  ;;  %p850_p11 = por %p849_p2, %p848_p10 }
  0x48   : > { %s434_s16 = scvt.s32.f32 %s433_s7 }
  0x49   : > { %p846_p9 = pneg %p845_p8 }
  0x4a   : > { %328 = vmatpush.bf16.msra.mxu0 %v599_v3  ;;  %v435_v33 = vstv %s434_s16 }
  0x4b   : > { %v436_v35 = vmul.f32 %v435_v33, %v280_v32  ;;  %v438_v36 = vmul.f32 %v435_v33, %v284_v34  ;;  %p851_p12 = pnand %p850_p11, %p846_p9 }
  0x4d   : > { %589 = vmatmul.msk.bf16.vlgmr.msra.gmra.mxu0 %vm317_vm0, %v276_v4  ;;  %v437_v37 = vadd.f32 %v436_v35, %v277_v28  ;;  %v439_v40 = vadd.f32 %v438_v36, %v281_v30 }
  0xca   : > { %v330_v5 = vpop.f32.mrf.mxu0 }
  0xcb   : > { %v335_v6 = vsel %vm334_vm1, %v330_v5, -inf }
  0xcc   : > { %336 = vmax.xlane.f32.xlu0 %v335_v6 }
  0xd2   : > { %v332_v7 = vpop.f32.mrf.mxu0 }
 0x13f   : > { %v337_v8 = vpop.xlane.xlu0 %336 }
 0x140   : > { %v338_v9 = vsub.f32 %v330_v5, %v337_v8 }
 0x142   : > { %v339_v10 = vmul.f32 1.442695, %v338_v9 }
 0x144   : > { %691 = vpow2.f32 %v339_v10 }
 0x14a   : > { %v692_v11 = vpop.eup %691 }
 0x14b   : > { %v341_v12 = vsel %vm334_vm1, %v692_v11, 0.0  ;;  %v345_v13 = vsel %vm344_vm2, %v692_v11, 0.015625 }
 0x14c   : > { %342 = vadd.xlane.f32.xlu0 %v341_v12  ;;  %v346_v14 = vpack.c.bf16 %v345_v13, %v345_v13 }
 0x14e   : > { %v360_v15 = vsel %vm317_vm0, %v346_v14, 0 }
 0x14f   : > { %369 = vmatpush.bf16.xpose.msra.mxu1 %v360_v15  ;;  %603 = vmatpush.bf16.xpose.msra.mxu2 %v360_v15 }
 0x150   : > { %604 = vmatpush.bf16.xpose.msra.mxu3 %v360_v15 }
 0x156   : > { %590 = vmatmul.msk.bf16.vlgmr.msra.gmra.mxu1 %vm317_vm0, %v599_v3  ;;  %591 = vmatmul.msk.bf16.vlgmr.msra.gmra.mxu2 %vm317_vm0, %v600_v2 }
 0x157   : > { %593 = vmatmul.msk.bf16.vlgmr.msra.gmra.mxu3 %vm317_vm0, %v602_v0 }
 0x166   : > { %592 = vmatmul.msk.bf16.gmra.mxu2 %vm317_vm0, %v601_v1 }
 0x1bf   : > { %v343_v17 = vpop.xlane.xlu0 %342 }
 0x1c0   : > { %693 = vrcp.f32 %v343_v17 }
 0x1c6   : > { %v694_v18 = vpop.eup %693 }
 0x1c7   : > { %v424_v19 = vsel %vm344_vm2, %v694_v18, 1.0 }
 0x1c8   : > { %427 = vperm.xlu2 %689, %v424_v19  }
 0x1d3   : > { %v371_v20 = vpop.f32.mrf.mxu1 }
 0x1d4   : > { %391 = vxpose.xlu1.b32.start [1/8] (short) (narrow) %v371_v20, 8 }
 0x1d9   : > { %v376_v22 = vpop.f32.mrf.mxu2 }
 0x1da   : > { %v386_v26 = vpop.f32.mrf.mxu3 }
 0x1db   : > { %v373_v21 = vpop.f32.mrf.mxu1 }
 0x1dc   : > { %392 = vxpose.xlu1.b32.cont [2/8] (short) (narrow) %v373_v21, 8 }
 0x1e1   : > { %v378_v23 = vpop.f32.mrf.mxu2 }
 0x1e2   : > { %v388_v27 = vpop.f32.mrf.mxu3 }
 0x1e4   : > { %393 = vxpose.xlu1.b32.cont [3/8] (short) (narrow) %v376_v22, 8 }
 0x1e9   : > { %v381_v24 = vpop.f32.mrf.mxu2 }
 0x1ec   : > { %394 = vxpose.xlu1.b32.cont [4/8] (short) (narrow) %v378_v23, 8 }
 0x1f1   : > { %v383_v25 = vpop.f32.mrf.mxu2 }
 0x1f4   : > { %395 = vxpose.xlu1.b32.cont [5/8] (short) (narrow) %v381_v24, 8 }
 0x1fc   : > { %396 = vxpose.xlu1.b32.cont [6/8] (short) (narrow) %v383_v25, 8 }
 0x204   : > { %397 = vxpose.xlu1.b32.cont [7/8] (short) (narrow) %v386_v26, 8 }
 0x20c   : > { %398 = vxpose.xlu1.b32.end [8/8] (short) (narrow) %v388_v27, 8 }
 0x222   : > { %v428_v38 = vpop.permute.xlu2 %427 }
 0x278   : > { %v407_v39 = vpop.trf.xlu1 }
 0x279   : > { %v430_v41 = vmul.f32 %v428_v38, %v407_v39 }
 0x27b   : > { %v440_v42 = vmul.f32 %v437_v37, %v430_v41 }
 0x27d   : > { %v441_v43 = vadd.f32 %v440_v42, %v439_v40 }
 0x27f   : > { %442 = vst.msk [vmem:[%s274_s11] sm:$0xff] %vm317_vm0, %v441_v43 }
 0x280   : > { %854 = shalt.err (!%p851_p12)
}
 0x281   : > { %619 = dma.vmem_to_hbm [thread:$0]  (%p1030_p7), %s457_s12, 128, %s459_s13, %s444_s0  }
 0x282 PF: > { %s470_s15 = sand.u32 1, %s891_s22   ;;  %p1130_p13 = scmp.ge.s32.totalorder %s903_s25, 2 }
 0x283   : > { %s471_s16 = scalar_lea.sflag [#allocation6], %s470_s15 }
 0x284   : > { %p636_p0 = pnand %p1130_p13, %p982_p6 }
 0x286   : > { %p637_p3 = pneg %p636_p0 }
 0x288   : > { %886 = dma.done.wait (%p637_p3), %s471_s16, 128  }
 0x289   : > { %888 = vsyncadd (%p637_p3), %s471_s16, 4294967168  ;;  %p28_p5 = scmp.ge.s32.totalorder %s1016_s29, 4   ;;  %s1131_s22 = smov %s895_s23 }
 0x28a   : > { %s1132_s23 = smov %s899_s24  ;;  %s1133_s24 = smov %s1026_s8 }
 0x28b   : > { %s1134_s25 = smov %s1016_s29  ;;  %30 = sbr.rel (!%p28_p5) target bundleno = 13 (0xd), region = 95 }
 0x290   :  { %477 = vsyncpa [#allocation5], 1 }
 0x291   :  { %479 = vsyncpa [#allocation5 + $0x1], 1 }
 0x292   :  { %480 = vsyncpa [#allocation8], 1 }
 0x293   :  { %481 = vsyncpa [#allocation11], 1 }
 0x294   :  { %482 = vsyncpa [#allocation6], 1 }
 0x295   :  { %484 = vsyncpa [#allocation6 + $0x1], 1 }

</bundles_post_ra>
